<compile_context>
chip_gen: v5e
topology: v5e:2x2
jax: 0.10.0
libtpu: 0.0.40
codegen_flags: <defaults>
</compile_context>

<pallas_src>
import jax
import jax.numpy as jnp
from jax.experimental import pallas as pl
from jax.experimental.pallas import tpu as pltpu


def _round_up(x, m):
    return (x + m - 1) // m * m


def _vmem_bytes_estimate(bm, d_s, d_a, hidden, in_bytes):
    """Rough per-call VMEM budget (double-buffered I/O + f32 intermediates)."""
    lane = 128
    pad = lambda d: _round_up(d, lane)
    inputs_db = 2 * bm * (pad(d_s) + pad(d_a)) * in_bytes      # xs/xa double buffers
    out_db = 2 * bm * lane * 4                                 # (bm, 1) f32, lane-padded
    mids = 4 * bm * pad(hidden) * 4                            # h1/h2/temporaries (f32)
    weights = 2 * (d_s + d_a + hidden + 8) * pad(hidden) * 4   # W1/W2/aux (generous)
    return inputs_db + out_db + mids + weights


def _maddpg_critic_kernel(xs_ref, xa_ref, w1a_ref, w1b_ref, w2_ref,
                          aux_ref, b3_ref, q_ref):
    # aux rows (f32): [b1; b2; w3^T]
    aux = aux_ref[...]
    b1 = aux[0:1, :]
    b2 = aux[1:2, :]
    w3 = aux[2:3, :]

    # fc1 on split inputs: concat(xs, xa) @ W1 == xs @ W1[:d_s] + xa @ W1[d_s:]
    h1 = jnp.dot(xs_ref[...], w1a_ref[...], preferred_element_type=jnp.float32)
    h1 = h1 + jnp.dot(xa_ref[...], w1b_ref[...],
                      preferred_element_type=jnp.float32)
    h1 = jnp.maximum(h1 + b1, 0.0)                 # bias + ReLU in f32
    h1 = h1.astype(w2_ref.dtype)                   # bf16 matmul path if enabled

    # fc2
    h2 = jnp.dot(h1, w2_ref[...], preferred_element_type=jnp.float32)
    h2 = jnp.maximum(h2 + b2, 0.0)

    # fc3: VPU multiply + lane reduce over hidden -> (bm, 1).  Avoids any
    # bm-scaling transpose of h2; output traffic is negligible anyway.
    q = jnp.sum(h2 * w3, axis=-1, keepdims=True) + b3_ref[0]
    q_ref[...] = q.astype(q_ref.dtype)


def maddpg_critic_forward(inputs, actions, params, *, block_batch=4096,
                          matmul_dtype=jnp.bfloat16, min_pallas_batch=256,
                          use_pallas=None):
    """inputs: [..., d_state], actions: [..., m*n] -> q: [..., 1]."""
    w1, b1, w2, b2, w3, b3 = (params[k] for k in ("w1", "b1", "w2", "b2", "w3", "b3"))

    d_s = inputs.shape[-1]
    d_a = actions.shape[-1]
    assert w1.shape[0] == d_s + d_a, "fc1 fan-in must equal d_state + m*n"
    hidden = w1.shape[1]
    assert block_batch % 128 == 0, "block_batch must be a multiple of 128"

    lead = inputs.shape[:-1]
    assert actions.shape[:-1] == lead
    xs = inputs.reshape(-1, d_s)
    xa = actions.reshape(-1, d_a)
    batch = xs.shape[0]

    if use_pallas is None:
        use_pallas = batch >= min_pallas_batch
    if not use_pallas:
        # Small-batch (acting-time) fast path: fused XLA beats the pallas_call
        # launch + single-step pipeline overhead when only a few KB move.
        x = jnp.concatenate([xs, xa], axis=-1)
        h1 = jnp.maximum(x @ w1 + b1.reshape(1, hidden), 0.0)
        h2 = jnp.maximum(h1 @ w2 + b2.reshape(1, hidden), 0.0)
        q = h2 @ w3.reshape(hidden, 1) + b3.reshape(1, 1)
        return q.reshape(lead + (1,))

    # Batch tile: as large as possible (amortize per-step overhead) but never
    # larger than the 8-rounded batch.  For large batches bm == block_batch and
    # the resulting multi-step "parallel" grid can shard across v7x's two TCs.
    bm = max(8, min(block_batch, _round_up(batch, 8)))
    padded = _round_up(batch, bm)
    pad = padded - batch
    if pad:
        xs = jnp.pad(xs, ((0, pad), (0, 0)))
        xa = jnp.pad(xa, ((0, pad), (0, 0)))

    # dtype plumbing: matmul operands may be bf16 (all generations; MXU takes
    # bf16 natively); accumulation, biases, ReLU and fc3 stay f32.
    xs = xs.astype(matmul_dtype)
    xa = xa.astype(matmul_dtype)
    w1a = w1[:d_s].astype(matmul_dtype)
    w1b = w1[d_s:].astype(matmul_dtype)
    w2m = w2.astype(matmul_dtype)
    aux = jnp.stack([b1.reshape(hidden), b2.reshape(hidden),
                     w3.reshape(hidden)], axis=0).astype(jnp.float32)  # (3, hidden)
    b3s = b3.reshape(1).astype(jnp.float32)                            # scalar -> SMEM

    grid = (padded // bm,)

    in_bytes = jnp.dtype(matmul_dtype).itemsize
    est = _vmem_bytes_estimate(bm, d_s, d_a, hidden, in_bytes)
    # Above v5e's 16 MiB default scoped limit, never above v7x's 64 MiB physical.
    vmem_limit = int(min(max(32 * 1024 * 1024, 2 * est), 64 * 1024 * 1024))

    q_col = pl.pallas_call(
        _maddpg_critic_kernel,
        out_shape=jax.ShapeDtypeStruct((padded, 1), jnp.float32),
        grid_spec=pltpu.PrefetchScalarGridSpec(
            num_scalar_prefetch=0,
            grid=grid,
            in_specs=[
                pl.BlockSpec((bm, d_s), lambda i: (i, 0)),          # state rows
                pl.BlockSpec((bm, d_a), lambda i: (i, 0)),          # action rows
                pl.BlockSpec((d_s, hidden), lambda i: (0, 0)),      # W1[:d_s]
                pl.BlockSpec((d_a, hidden), lambda i: (0, 0)),      # W1[d_s:]
                pl.BlockSpec((hidden, hidden), lambda i: (0, 0)),   # W2
                pl.BlockSpec((3, hidden), lambda i: (0, 0)),        # [b1; b2; w3]
                pl.BlockSpec(memory_space=pltpu.MemorySpace.SMEM),  # b3 scalar
            ],
            out_specs=pl.BlockSpec((bm, 1), lambda i: (i, 0)),
        ),
        compiler_params=pltpu.CompilerParams(
            dimension_semantics=("parallel",),
            vmem_limit_bytes=vmem_limit),
    )(xs, xa, w1a, w1b, w2m, aux, b3s)

    q = q_col[:batch, 0]
    return q.reshape(lead + (1,))


def init_params(key, input_shape, hidden_dim):
    """Deterministic init mimicking nn.Linear default (U[-1/sqrt(fan_in), +])."""
    ks = jax.random.split(key, 6)

    def lin(kw, kb, fan_in, fan_out):
        bound = 1.0 / jnp.sqrt(jnp.float32(fan_in))
        w = jax.random.uniform(kw, (fan_in, fan_out), jnp.float32, -bound, bound)
        b = jax.random.uniform(kb, (1, fan_out), jnp.float32, -bound, bound)
        return w, b

    w1, b1 = lin(ks[0], ks[1], input_shape, hidden_dim)
    w2, b2 = lin(ks[2], ks[3], hidden_dim, hidden_dim)
    w3, b3 = lin(ks[4], ks[5], hidden_dim, 1)
    return dict(w1=w1, b1=b1, w2=w2, b2=b2, w3=w3, b3=b3)


def reference_forward(inputs, actions, p):
    x = jnp.concatenate([inputs, actions], axis=-1)
    h1 = jnp.maximum(x @ p["w1"] + p["b1"], 0.0)
    h2 = jnp.maximum(h1 @ p["w2"] + p["b2"], 0.0)
    return h2 @ p["w3"] + p["b3"]


if __name__ == "__main__":
    # Config mirroring MADDPGCritic.__init__:
    #   scheme['state']['vshape'] = 40, obs_agent_id -> +n, n=4, m=6
    #   obs_individual_obs=False, obs_last_action=False
    #   input_shape = 40 + n + m*n = 40 + 4 + 24 = 68
    state_vshape = 40
    n_agents = 4
    m_actions = 6
    hidden_dim = 32

    d_state = state_vshape + n_agents          # state + agent-id one-hot part
    d_act = m_actions * n_agents               # joint actions (m * n)
    input_shape = d_state + d_act              # 68

    key = jax.random.PRNGKey(0)
    k1, k2, k3, k4, k5, k6, k_par = jax.random.split(key, 7)
    params = init_params(k_par, input_shape, hidden_dim)

    # (A) tiny acting-time batch -> XLA fast path (exact vs reference).
    batch_a = 8
    ia = jax.random.normal(k1, (batch_a, d_state), jnp.float32)
    aa = jax.random.normal(k2, (batch_a, d_act), jnp.float32)
    qa = jax.block_until_ready(maddpg_critic_forward(ia, aa, params))
    qa_ref = reference_forward(ia, aa, params)
    assert qa.shape == (batch_a, 1)
    assert jnp.allclose(qa, qa_ref, atol=2e-5, rtol=2e-5)

    # (B) Pallas path, f32 operands, single padded tile (batch not /128).
    batch_b = 300
    ib = jax.random.normal(k3, (batch_b, d_state), jnp.float32)
    ab = jax.random.normal(k4, (batch_b, d_act), jnp.float32)
    qb = maddpg_critic_forward(ib, ab, params, use_pallas=True,
                               matmul_dtype=jnp.float32)
    qb = jax.block_until_ready(qb)
    qb_ref = reference_forward(ib, ab, params)
    assert qb.shape == (batch_b, 1)
    assert jnp.allclose(qb, qb_ref, atol=2e-5, rtol=2e-5)

    # (C) Pallas path, f32 operands, multi-step grid (4 batch tiles).
    batch_c = 1024
    ic = jax.random.normal(k5, (batch_c, d_state), jnp.float32)
    ac = jax.random.normal(k6, (batch_c, d_act), jnp.float32)
    qc = maddpg_critic_forward(ic, ac, params, use_pallas=True,
                               block_batch=256, matmul_dtype=jnp.float32)
    qc = jax.block_until_ready(qc)
    qc_ref = reference_forward(ic, ac, params)
    assert qc.shape == (batch_c, 1)
    assert jnp.allclose(qc, qc_ref, atol=2e-5, rtol=2e-5)

    # (D) default path (bf16 streamed operands, big tile) -- training-time
    # configuration; ~1e-3-level deviation from the f32 reference is expected.
    qd = jax.block_until_ready(maddpg_critic_forward(ic, ac, params))
    assert qd.shape == (batch_c, 1)
    assert float(jnp.max(jnp.abs(qd - qc_ref))) < 1e-1

    print("KERNEL_OK")
</pallas_src>

<mosaic_0001>
module attributes {stable_mosaic.version = 11 : i64} {
  func.func @_maddpg_critic_kernel(%arg0: i32, %arg1: memref<304x44xf32, #tpu.memory_space<vmem>>, %arg2: memref<304x24xf32, #tpu.memory_space<vmem>>, %arg3: memref<44x32xf32, #tpu.memory_space<vmem>>, %arg4: memref<24x32xf32, #tpu.memory_space<vmem>>, %arg5: memref<32x32xf32, #tpu.memory_space<vmem>>, %arg6: memref<3x32xf32, #tpu.memory_space<vmem>>, %arg7: memref<1xf32, #tpu.memory_space<smem>>, %arg8: memref<304x1xf32, #tpu.memory_space<vmem>>) attributes {dimension_semantics = [#tpu.dimension_semantics<parallel>], iteration_bounds = array<i64: 1>, scalar_prefetch = 0 : i64, scratch_operands = 0 : i64, tpu.core_type = #tpu.core_type<tc>, window_params = [{transform_indices = @transform_0, window_bounds = array<i64: 304, 44>}, {transform_indices = @transform_1, window_bounds = array<i64: 304, 24>}, {pipeline_mode = #tpu.pipeline_mode<synchronous>, transform_indices = @transform_2, window_bounds = array<i64: 44, 32>}, {pipeline_mode = #tpu.pipeline_mode<synchronous>, transform_indices = @transform_3, window_bounds = array<i64: 24, 32>}, {pipeline_mode = #tpu.pipeline_mode<synchronous>, transform_indices = @transform_4, window_bounds = array<i64: 32, 32>}, {pipeline_mode = #tpu.pipeline_mode<synchronous>, transform_indices = @transform_5, window_bounds = array<i64: 3, 32>}, {transform_indices = @transform_6, window_bounds = array<i64: 1>}, {transform_indices = @transform_7, window_bounds = array<i64: 304, 1>}]} {
    %c0 = arith.constant 0 : index
    %c0_0 = arith.constant 0 : index
    %0 = vector.load %arg6[%c0, %c0_0] : memref<3x32xf32, #tpu.memory_space<vmem>>, vector<3x32xf32>
    %1 = vector.extract_strided_slice %0 {offsets = [0, 0], sizes = [1, 32], strides = [1, 1]} : vector<3x32xf32> to vector<1x32xf32>
    %2 = vector.extract_strided_slice %0 {offsets = [1, 0], sizes = [1, 32], strides = [1, 1]} : vector<3x32xf32> to vector<1x32xf32>
    %3 = vector.extract_strided_slice %0 {offsets = [2, 0], sizes = [1, 32], strides = [1, 1]} : vector<3x32xf32> to vector<1x32xf32>
    %c0_1 = arith.constant 0 : index
    %c0_2 = arith.constant 0 : index
    %4 = vector.load %arg1[%c0_1, %c0_2] : memref<304x44xf32, #tpu.memory_space<vmem>>, vector<304x44xf32>
    %c0_3 = arith.constant 0 : index
    %c0_4 = arith.constant 0 : index
    %5 = vector.load %arg3[%c0_3, %c0_4] : memref<44x32xf32, #tpu.memory_space<vmem>>, vector<44x32xf32>
    %cst = arith.constant dense<0.000000e+00> : vector<304x32xf32>
    %6 = tpu.matmul %4, %5, %cst {dimension_numbers = #tpu.dot_dimension_numbers<[1], [0], [0], [1], [0, 0, 1, 1], [], []>} : vector<304x44xf32>, vector<44x32xf32>, vector<304x32xf32> -> vector<304x32xf32>
    %c0_5 = arith.constant 0 : index
    %c0_6 = arith.constant 0 : index
    %7 = vector.load %arg2[%c0_5, %c0_6] : memref<304x24xf32, #tpu.memory_space<vmem>>, vector<304x24xf32>
    %c0_7 = arith.constant 0 : index
    %c0_8 = arith.constant 0 : index
    %8 = vector.load %arg4[%c0_7, %c0_8] : memref<24x32xf32, #tpu.memory_space<vmem>>, vector<24x32xf32>
    %cst_9 = arith.constant dense<0.000000e+00> : vector<304x32xf32>
    %9 = tpu.matmul %7, %8, %cst_9 {dimension_numbers = #tpu.dot_dimension_numbers<[1], [0], [0], [1], [0, 0, 1, 1], [], []>} : vector<304x24xf32>, vector<24x32xf32>, vector<304x32xf32> -> vector<304x32xf32>
    %10 = arith.addf %6, %9 : vector<304x32xf32>
    %11 = vector.broadcast %1 : vector<1x32xf32> to vector<304x32xf32>
    %12 = arith.addf %10, %11 : vector<304x32xf32>
    %cst_10 = arith.constant 0.000000e+00 : f32
    %13 = vector.broadcast %cst_10 : f32 to vector<304x32xf32>
    %14 = arith.maximumf %12, %13 : vector<304x32xf32>
    %c0_11 = arith.constant 0 : index
    %c0_12 = arith.constant 0 : index
    %15 = vector.load %arg5[%c0_11, %c0_12] : memref<32x32xf32, #tpu.memory_space<vmem>>, vector<32x32xf32>
    %cst_13 = arith.constant dense<0.000000e+00> : vector<304x32xf32>
    %16 = tpu.matmul %14, %15, %cst_13 {dimension_numbers = #tpu.dot_dimension_numbers<[1], [0], [0], [1], [0, 0, 1, 1], [], []>} : vector<304x32xf32>, vector<32x32xf32>, vector<304x32xf32> -> vector<304x32xf32>
    %17 = vector.broadcast %2 : vector<1x32xf32> to vector<304x32xf32>
    %18 = arith.addf %16, %17 : vector<304x32xf32>
    %cst_14 = arith.constant 0.000000e+00 : f32
    %19 = vector.broadcast %cst_14 : f32 to vector<304x32xf32>
    %20 = arith.maximumf %18, %19 : vector<304x32xf32>
    %21 = vector.broadcast %3 : vector<1x32xf32> to vector<304x32xf32>
    %22 = arith.mulf %20, %21 : vector<304x32xf32>
    %cst_15 = arith.constant dense<0.000000e+00> : vector<304xf32>
    %23 = vector.multi_reduction <add>, %22, %cst_15 [1] : vector<304x32xf32> to vector<304xf32>
    %24 = vector.shape_cast %23 : vector<304xf32> to vector<304x1xf32>
    %c0_16 = arith.constant 0 : index
    %25 = memref.load %arg7[%c0_16] : memref<1xf32, #tpu.memory_space<smem>>
    %26 = vector.broadcast %25 : f32 to vector<304x1xf32>
    %27 = arith.addf %24, %26 : vector<304x1xf32>
    %c0_17 = arith.constant 0 : index
    %c0_18 = arith.constant 0 : index
    %28 = vector.load %arg8[%c0_17, %c0_18] : memref<304x1xf32, #tpu.memory_space<vmem>>, vector<304x1xf32>
    tpu.vector_store %arg8[%c0_17, %c0_18], %27 {strides = array<i32>} : memref<304x1xf32, #tpu.memory_space<vmem>>, vector<304x1xf32>,
    return
  }
  func.func @transform_0(%arg0: i32) -> (i32, i32) {
    %c0_i32 = arith.constant 0 : i32
    %c0_i32_0 = arith.constant 0 : i32
    return %arg0, %c0_i32 : i32, i32
  }
  func.func @transform_1(%arg0: i32) -> (i32, i32) {
    %c0_i32 = arith.constant 0 : i32
    %c0_i32_0 = arith.constant 0 : i32
    return %arg0, %c0_i32 : i32, i32
  }
  func.func @transform_2(%arg0: i32) -> (i32, i32) {
    %c0_i32 = arith.constant 0 : i32
    %c0_i32_0 = arith.constant 0 : i32
    %c0_i32_1 = arith.constant 0 : i32
    return %c0_i32, %c0_i32_0 : i32, i32
  }
  func.func @transform_3(%arg0: i32) -> (i32, i32) {
    %c0_i32 = arith.constant 0 : i32
    %c0_i32_0 = arith.constant 0 : i32
    %c0_i32_1 = arith.constant 0 : i32
    return %c0_i32, %c0_i32_0 : i32, i32
  }
  func.func @transform_4(%arg0: i32) -> (i32, i32) {
    %c0_i32 = arith.constant 0 : i32
    %c0_i32_0 = arith.constant 0 : i32
    %c0_i32_1 = arith.constant 0 : i32
    return %c0_i32, %c0_i32_0 : i32, i32
  }
  func.func @transform_5(%arg0: i32) -> (i32, i32) {
    %c0_i32 = arith.constant 0 : i32
    %c0_i32_0 = arith.constant 0 : i32
    %c0_i32_1 = arith.constant 0 : i32
    return %c0_i32, %c0_i32_0 : i32, i32
  }
  func.func @transform_6(%arg0: i32) -> i32 {
    %c0_i32 = arith.constant 0 : i32
    %c0_i32_0 = arith.constant 0 : i32
    return %c0_i32 : i32
  }
  func.func @transform_7(%arg0: i32) -> (i32, i32) {
    %c0_i32 = arith.constant 0 : i32
    %c0_i32_0 = arith.constant 0 : i32
    return %arg0, %c0_i32 : i32, i32
  }
}

</mosaic_0001>

<bundles_post_ra>
// kernel: tpu_custom_call.1
= control target key start
LH: loop header
LB: loop body
LE: loop exit
PB: predicated region body
PF: predicated region fallthrough
CT: control target
= control target key end

     0   :  { %vm474_vm0 = vcmask 1043456   ;;  %vm113_vm1 = vcmask 195584   ;;  %vm359_vm2 = vcmask 359424   ;;  %vm691_vm3 = vcmask 261120   ;;  %s2153_s3 = inlined_call_operand.vmem [shape: f32[24,32], index: 3, kind: input, shape index: {}]   ;;  %s2154_s2 = inlined_call_operand.vmem [shape: f32[44,32], index: 2, kind: input, shape index: {}]   ;;  %s2155_s1 = inlined_call_operand.vmem [shape: f32[304,24], index: 1, kind: input, shape index: {}]   ;;  %s2156_s0 = inlined_call_operand.vmem [shape: f32[304,44], index: 0, kind: input, shape index: {}]   ;;  %s2157_s4 = inlined_call_operand.vmem [shape: f32[32,32], index: 4, kind: input, shape index: {}]   ;;  %s2158_s5 = inlined_call_operand.vmem [shape: f32[3,32], index: 5, kind: input, shape index: {}]   ;;  %s2159_s6 = inlined_call_operand.<no memory space> [shape: f32[1], index: 6, kind: input, shape index: {}]   ;;  %s2160_s7 = inlined_call_operand.vmem [shape: f32[304,1], index: 7, kind: output, shape index: {}]  }
   0x1   :  { %v112_v0 = vld [vmem:[%s2153_s3 + $0x10] sm:$0xff]  ;;  %v71_v1 = vld [vmem:[%s2154_s2 + $0x28] sm:$0xf]  ;;  %v70_v3 = vld [vmem:[%s2154_s2 + $0x20] sm:$0xff]  ;;  %vm1168_vm4 = vcmask 7168  }
   0x2   :  { %v111_v2 = vld [vmem:[%s2153_s3 + $0x8] sm:$0xff]  ;;  %241 = vmatpush.msra.mxu0 %v112_v0  ;;  %1326 = vmatpush.msra.mxu3 %v112_v0  ;;  %v110_v4 = vld [vmem:[%s2153_s3] sm:$0xff]  ;;  %v69_v5 = vld [vmem:[%s2154_s2 + $0x18] sm:$0xff] }
   0x3   :  { %1249 = vmatpush.msk.msra.mxu1 %vm474_vm0, %v71_v1  ;;  %v72_v6 = vld [vmem:[%s2155_s1] sm:$0xff]  ;;  %v101_v7 = vld [vmem:[%s2155_s1 + $0xe8] sm:$0xff]  ;;  %v68_v8 = vld [vmem:[%s2154_s2 + $0x10] sm:$0xff] }
   0x4   :  { %242 = vmatpush.msra.mxu0 %v111_v2  ;;  %1327 = vmatpush.msra.mxu3 %v111_v2  ;;  %v67_v9 = vld [vmem:[%s2154_s2 + $0x8] sm:$0xff]  ;;  %v66_v10 = vld [vmem:[%s2154_s2] sm:$0xff]  ;;  %v102_v13 = vld [vmem:[%s2155_s1 + $0xf0] sm:$0xff] }
   0x5   :  { %489 = vmatpush.msra.mxu1 %v70_v3  ;;  %v28_v11 = vld [vmem:[%s2156_s0] sm:$0xff]  ;;  %v73_v12 = vld [vmem:[%s2155_s1 + $0x8] sm:$0xff]  ;;  %v74_v15 = vld [vmem:[%s2155_s1 + $0x10] sm:$0xff] }
   0x6   :  { %243 = vmatpush.msra.mxu0 %v110_v4  ;;  %1328 = vmatpush.msra.mxu3 %v110_v4  ;;  %v29_v14 = vld [vmem:[%s2156_s0 + $0x8] sm:$0xff]  ;;  %v103_v16 = vld [vmem:[%s2155_s1 + $0xf8] sm:$0xff]  ;;  %v30_v17 = vld [vmem:[%s2156_s0 + $0x10] sm:$0xff] }
   0x7   :  { %490 = vmatpush.msra.mxu1 %v69_v5  ;;  %1211 = vmatmul.msk.f32.vlgmr.msra.gmra.mxu0 %vm113_vm1, %v72_v6  ;;  %v75_v18 = vld [vmem:[%s2155_s1 + $0x18] sm:$0xff]  ;;  %v104_v19 = vld [vmem:[%s2155_s1 + $0x100] sm:$0xff]  ;;  %v105_v22 = vld [vmem:[%s2155_s1 + $0x108] sm:$0xff] }
   0x8   :  { %1240 = vmatmul.msk.f32.vlgmr.msra.gmra.mxu3 %vm113_vm1, %v101_v7  ;;  %v31_v20 = vld [vmem:[%s2156_s0 + $0x18] sm:$0xff]  ;;  %v76_v21 = vld [vmem:[%s2155_s1 + $0x20] sm:$0xff]  ;;  %v77_v24 = vld [vmem:[%s2155_s1 + $0x28] sm:$0xff] }
   0x9   :  { %491 = vmatpush.msra.mxu1 %v68_v8  ;;  %1329 = vmatpush.msk.msrb.mxu3 %vm474_vm0, %v71_v1  ;;  %v32_v23 = vld [vmem:[%s2156_s0 + $0x20] sm:$0xff]  ;;  %v106_v25 = vld [vmem:[%s2155_s1 + $0x110] sm:$0xff]  ;;  %v33_v26 = vld [vmem:[%s2156_s0 + $0x28] sm:$0xff] }
   0xa   :  { %v78_v27 = vld [vmem:[%s2155_s1 + $0x30] sm:$0xff]  ;;  %v107_v28 = vld [vmem:[%s2155_s1 + $0x118] sm:$0xff]  ;;  %v108_v31 = vld [vmem:[%s2155_s1 + $0x120] sm:$0xff] }
   0xb   :  { %492 = vmatpush.msra.mxu1 %v67_v9  ;;  %1330 = vmatpush.msrb.mxu3 %v70_v3  ;;  %v34_v29 = vld [vmem:[%s2156_s0 + $0x30] sm:$0xff]  ;;  %v79_v30 = vld [vmem:[%s2155_s1 + $0x38] sm:$0xff]  ;;  %v80_v33 = vld [vmem:[%s2155_s1 + $0x40] sm:$0xff] }
   0xc   :  { %v35_v32 = vld [vmem:[%s2156_s0 + $0x38] sm:$0xff]  ;;  %v109_v34 = vld [vmem:[%s2155_s1 + $0x128] sm:$0xff]  ;;  %v36_v35 = vld [vmem:[%s2156_s0 + $0x40] sm:$0xff] }
   0xd   :  { %493 = vmatpush.msra.mxu1 %v66_v10  ;;  %1331 = vmatpush.msrb.mxu3 %v69_v5  ;;  %v81_v36 = vld [vmem:[%s2155_s1 + $0x48] sm:$0xff]  ;;  %v56_v37 = vld [vmem:[%s2156_s0 + $0xe0] sm:$0xff]  ;;  %v82_v39 = vld [vmem:[%s2155_s1 + $0x50] sm:$0xff] }
   0xe   :  { %1250 = vmatmul.msk.f32.vlgmr.msra.gmra.mxu1 %vm359_vm2, %v28_v11  ;;  %v37_v38 = vld [vmem:[%s2156_s0 + $0x48] sm:$0xff]  ;;  %v38_v41 = vld [vmem:[%s2156_s0 + $0x50] sm:$0xff]  ;;  %v83_v42 = vld [vmem:[%s2155_s1 + $0x58] sm:$0xff] }
   0xf   :  { %1212 = vmatmul.msk.f32.gmra.mxu0 %vm113_vm1, %v73_v12  ;;  %1332 = vmatpush.msrb.mxu3 %v68_v8  ;;  %v57_v40 = vld [vmem:[%s2156_s0 + $0xe8] sm:$0xff]  ;;  %v58_v43 = vld [vmem:[%s2156_s0 + $0xf0] sm:$0xff]  ;;  %v39_v44 = vld [vmem:[%s2156_s0 + $0x58] sm:$0xff] }
  0x10   :  { %1241 = vmatmul.msk.f32.gmra.mxu3 %vm113_vm1, %v102_v13  ;;  %v84_v45 = vld [vmem:[%s2155_s1 + $0x60] sm:$0xff]  ;;  %v59_v46 = vld [vmem:[%s2156_s0 + $0xf8] sm:$0xff]  ;;  %v85_v49 = vld [vmem:[%s2155_s1 + $0x68] sm:$0xff] }
  0x11   :  { %1333 = vmatpush.msrb.mxu3 %v67_v9  ;;  %v689_v47 = vld [vmem:[%s2157_s4 + $0x18] sm:$0xff]  ;;  %v40_v48 = vld [vmem:[%s2156_s0 + $0x60] sm:$0xff]  ;;  %v688_v50 = vld [vmem:[%s2157_s4 + $0x10] sm:$0xff] }
  0x12   :  { %818 = vmatpush.msra.mxu2 %v689_v47  ;;  %v60_v51 = vld [vmem:[%s2156_s0 + $0x100] sm:$0xff]  ;;  %v687_v52 = vld [vmem:[%s2157_s4 + $0x8] sm:$0xff]  ;;  %v86_v55 = vld [vmem:[%s2155_s1 + $0x70] sm:$0xff] }
  0x13   :  { %1334 = vmatpush.msrb.mxu3 %v66_v10  ;;  %v686_v53 = vld [vmem:[%s2157_s4] sm:$0xff]  ;;  %v41_v54 = vld [vmem:[%s2156_s0 + $0x68] sm:$0xff]  ;;  %v42_v57 = vld [vmem:[%s2156_s0 + $0x70] sm:$0xff] }
  0x14   :  { %819 = vmatpush.msra.mxu2 %v688_v50  ;;  %v61_v56 = vld [vmem:[%s2156_s0 + $0x108] sm:$0xff]  ;;  %v87_v58 = vld [vmem:[%s2155_s1 + $0x78] sm:$0xff]  ;;  %v62_v59 = vld [vmem:[%s2156_s0 + $0x110] sm:$0xff] }
  0x15   :  { %1335 = vmatpush.msra.mxu3 %v689_v47  ;;  %v43_v60 = vld [vmem:[%s2156_s0 + $0x78] sm:$0xff]  ;;  %v88_v62 = vld [vmem:[%s2155_s1 + $0x80] sm:$0xff]  ;;  %v89_v7 = vld [vmem:[%s2155_s1 + $0x88] sm:$0xff] }
  0x16   :  { %1251 = vmatmul.msk.f32.gmra.mxu1 %vm359_vm2, %v29_v14  ;;  %820 = vmatpush.msra.mxu2 %v687_v52  ;;  %v63_v63 = vld [vmem:[%s2156_s0 + $0x118] sm:$0xff]  ;;  %v1622_v0 = vld [vmem:[%s2158_s5] sm:$0x7]  ;;  %v45_v13 = vld [vmem:[%s2156_s0 + $0x88] sm:$0xff] }
  0x17   :  { %1213 = vmatmul.msk.f32.gmra.mxu0 %vm113_vm1, %v74_v15  ;;  %1336 = vmatpush.msra.mxu3 %v688_v50  ;;  %v1626_v1 = vperm.slane %v1622_v0, 0  ;;  %v44_v4 = vld [vmem:[%s2156_s0 + $0x80] sm:$0xff] }
  0x18   :  { %1242 = vmatmul.msk.f32.gmra.mxu3 %vm113_vm1, %v103_v16  ;;  %821 = vmatpush.msra.mxu2 %v686_v53  ;;  %v64_v8 = vld [vmem:[%s2156_s0 + $0x120] sm:$0xff]  ;;  %v90_v16 = vld [vmem:[%s2155_s1 + $0x90] sm:$0xff] }
  0x19   :  { %1337 = vmatpush.msra.mxu3 %v687_v52 }
  0x1b   :  { %1338 = vmatpush.msra.mxu3 %v686_v53 }
  0x1e   :  { %1252 = vmatmul.msk.f32.gmra.mxu1 %vm359_vm2, %v30_v17  ;;  %v65_v17 = vld [vmem:[%s2156_s0 + $0x128] sm:$0xff] }
  0x1f   :  { %1214 = vmatmul.msk.f32.gmra.mxu0 %vm113_vm1, %v75_v18 }
  0x20   :  { %1243 = vmatmul.msk.f32.gmra.mxu3 %vm113_vm1, %v104_v19 }
  0x26   :  { %1253 = vmatmul.msk.f32.gmra.mxu1 %vm359_vm2, %v31_v20 }
  0x27   :  { %1215 = vmatmul.msk.f32.gmra.mxu0 %vm113_vm1, %v76_v21 }
  0x28   :  { %1244 = vmatmul.msk.f32.gmra.mxu3 %vm113_vm1, %v105_v22  ;;  %v46_v22 = vld [vmem:[%s2156_s0 + $0x90] sm:$0xff] }
  0x2e   :  { %1254 = vmatmul.msk.f32.gmra.mxu1 %vm359_vm2, %v32_v23 }
  0x2f   :  { %1216 = vmatmul.msk.f32.gmra.mxu0 %vm113_vm1, %v77_v24 }
  0x30   :  { %1245 = vmatmul.msk.f32.gmra.mxu3 %vm113_vm1, %v106_v25  ;;  %v91_v25 = vld [vmem:[%s2155_s1 + $0x98] sm:$0xff] }
  0x36   :  { %1255 = vmatmul.msk.f32.gmra.mxu1 %vm359_vm2, %v33_v26 }
  0x37   :  { %1217 = vmatmul.msk.f32.gmra.mxu0 %vm113_vm1, %v78_v27 }
  0x38   :  { %1246 = vmatmul.msk.f32.gmra.mxu3 %vm113_vm1, %v107_v28 }
  0x3e   :  { %1256 = vmatmul.msk.f32.gmra.mxu1 %vm359_vm2, %v34_v29 }
  0x3f   :  { %1218 = vmatmul.msk.f32.gmra.mxu0 %vm113_vm1, %v79_v30  ;;  %v47_v30 = vld [vmem:[%s2156_s0 + $0x98] sm:$0xff] }
  0x40   :  { %1247 = vmatmul.msk.f32.gmra.mxu3 %vm113_vm1, %v108_v31 }
  0x46   :  { %1257 = vmatmul.msk.f32.gmra.mxu1 %vm359_vm2, %v35_v32 }
  0x47   :  { %1219 = vmatmul.msk.f32.gmra.mxu0 %vm113_vm1, %v80_v33  ;;  %v92_v33 = vld [vmem:[%s2155_s1 + $0xa0] sm:$0xff] }
  0x48   :  { %1248 = vmatmul.msk.f32.gmra.mxu3 %vm113_vm1, %v109_v34 }
  0x4e   :  { %1258 = vmatmul.msk.f32.gmra.mxu1 %vm359_vm2, %v36_v35 }
  0x4f   :  { %1220 = vmatmul.msk.f32.gmra.mxu0 %vm113_vm1, %v81_v36 }
  0x50   :  { %1278 = vmatmul.msk.f32.vlgmr.msrb.gmra.mxu3 %vm359_vm2, %v56_v37 }
  0x56   :  { %1259 = vmatmul.msk.f32.gmra.mxu1 %vm359_vm2, %v37_v38  ;;  %v48_v38 = vld [vmem:[%s2156_s0 + $0xa0] sm:$0xff] }
  0x57   :  { %1221 = vmatmul.msk.f32.gmra.mxu0 %vm113_vm1, %v82_v39 }
  0x58   :  { %1279 = vmatmul.msk.f32.gmra.mxu3 %vm359_vm2, %v57_v40 }
  0x5e   :  { %1260 = vmatmul.msk.f32.gmra.mxu1 %vm359_vm2, %v38_v41  ;;  %v93_v41 = vld [vmem:[%s2155_s1 + $0xa8] sm:$0xff] }
  0x5f   :  { %1222 = vmatmul.msk.f32.gmra.mxu0 %vm113_vm1, %v83_v42 }
  0x60   :  { %1280 = vmatmul.msk.f32.gmra.mxu3 %vm359_vm2, %v58_v43 }
  0x66   :  { %1261 = vmatmul.msk.f32.gmra.mxu1 %vm359_vm2, %v39_v44 }
  0x67   :  { %1223 = vmatmul.msk.f32.gmra.mxu0 %vm113_vm1, %v84_v45 }
  0x68   :  { %1281 = vmatmul.msk.f32.gmra.mxu3 %vm359_vm2, %v59_v46  ;;  %v49_v46 = vld [vmem:[%s2156_s0 + $0xa8] sm:$0xff] }
  0x6e   :  { %1262 = vmatmul.msk.f32.gmra.mxu1 %vm359_vm2, %v40_v48 }
  0x6f   :  { %1224 = vmatmul.msk.f32.gmra.mxu0 %vm113_vm1, %v85_v49  ;;  %v94_v49 = vld [vmem:[%s2155_s1 + $0xb0] sm:$0xff] }
  0x70   :  { %1282 = vmatmul.msk.f32.gmra.mxu3 %vm359_vm2, %v60_v51 }
  0x76   :  { %1263 = vmatmul.msk.f32.gmra.mxu1 %vm359_vm2, %v41_v54  ;;  %v50_v54 = vld [vmem:[%s2156_s0 + $0xb0] sm:$0xff] }
  0x77   :  { %1225 = vmatmul.msk.f32.gmra.mxu0 %vm113_vm1, %v86_v55 }
  0x78   :  { %1283 = vmatmul.msk.f32.gmra.mxu3 %vm359_vm2, %v61_v56 }
  0x7e   :  { %1264 = vmatmul.msk.f32.gmra.mxu1 %vm359_vm2, %v42_v57  ;;  %v95_v57 = vld [vmem:[%s2155_s1 + $0xb8] sm:$0xff] }
  0x7f   :  { %1226 = vmatmul.msk.f32.gmra.mxu0 %vm113_vm1, %v87_v58 }
  0x80   :  { %1284 = vmatmul.msk.f32.gmra.mxu3 %vm359_vm2, %v62_v59 }
  0x84   :  { %v245_v61 = vpop.f32.mrf.mxu0 }
  0x86   :  { %1265 = vmatmul.msk.f32.gmra.mxu1 %vm359_vm2, %v43_v60 }
  0x87   :  { %1227 = vmatmul.msk.f32.gmra.mxu0 %vm113_vm1, %v88_v62  ;;  %v51_v62 = vld [vmem:[%s2156_s0 + $0xb8] sm:$0xff] }
  0x88   :  { %1285 = vmatmul.msk.f32.gmra.mxu3 %vm359_vm2, %v63_v63 }
  0x8b   :  { %v1628_v2 = vpop.f32.mrf.mxu3  ;;  %v495_v3 = vpop.f32.mrf.mxu1 }
  0x8c   :  { %v496_v5 = vadd.f32 %v495_v3, %v245_v61  ;;  %v248_v6 = vpop.f32.mrf.mxu0 }
  0x8e   :  { %v610_v9 = vadd.f32 %v1626_v1, %v496_v5  ;;  %1266 = vmatmul.msk.f32.gmra.mxu1 %vm359_vm2, %v44_v4  ;;  %v96_v4 = vld [vmem:[%s2155_s1 + $0xc0] sm:$0xff] }
  0x8f   :  { %1228 = vmatmul.msk.f32.gmra.mxu0 %vm113_vm1, %v89_v7 }
  0x90   :  { %1286 = vmatmul.msk.f32.gmra.mxu3 %vm359_vm2, %v64_v8  ;;  %v648_v10 = vmax.f32 %v610_v9, 0.0  ;;  %v52_v9 = vld [vmem:[%s2156_s0 + $0xc0] sm:$0xff] }
  0x92   :  { %1288 = vmatmul.msk.f32.vlgmr.msra.gmra.mxu2 %vm691_vm3, %v648_v10 }
  0x93   :  { %v1644_v11 = vpop.f32.mrf.mxu3  ;;  %v498_v12 = vpop.f32.mrf.mxu1 }
  0x94   :  { %v499_v14 = vadd.f32 %v498_v12, %v248_v6  ;;  %v251_v15 = vpop.f32.mrf.mxu0 }
  0x96   :  { %v611_v18 = vadd.f32 %v1626_v1, %v499_v14  ;;  %1267 = vmatmul.msk.f32.gmra.mxu1 %vm359_vm2, %v45_v13  ;;  %v97_v13 = vld [vmem:[%s2155_s1 + $0xc8] sm:$0xff] }
  0x97   :  { %1229 = vmatmul.msk.f32.gmra.mxu0 %vm113_vm1, %v90_v16 }
  0x98   :  { %1287 = vmatmul.msk.f32.gmra.mxu3 %vm359_vm2, %v65_v17  ;;  %v649_v19 = vmax.f32 %v611_v18, 0.0  ;;  %v53_v18 = vld [vmem:[%s2156_s0 + $0xc8] sm:$0xff] }
  0x9a   :  { %1289 = vmatmul.msk.f32.gmra.mxu2 %vm691_vm3, %v649_v19 }
  0x9b   :  { %v1660_v20 = vpop.f32.mrf.mxu3  ;;  %v501_v21 = vpop.f32.mrf.mxu1 }
  0x9c   :  { %v502_v23 = vadd.f32 %v501_v21, %v251_v15  ;;  %v254_v24 = vpop.f32.mrf.mxu0 }
  0x9e   :  { %v612_v26 = vadd.f32 %v1626_v1, %v502_v23  ;;  %1268 = vmatmul.msk.f32.gmra.mxu1 %vm359_vm2, %v46_v22  ;;  %v98_v22 = vld [vmem:[%s2155_s1 + $0xd0] sm:$0xff] }
  0x9f   :  { %1230 = vmatmul.msk.f32.gmra.mxu0 %vm113_vm1, %v91_v25 }
  0xa0   :  { %v650_v27 = vmax.f32 %v612_v26, 0.0 }
  0xa2   :  { %1290 = vmatmul.msk.f32.gmra.mxu2 %vm691_vm3, %v650_v27  ;;  %v54_v27 = vld [vmem:[%s2156_s0 + $0xd0] sm:$0xff] }
  0xa3   :  { %v1672_v28 = vpop.f32.mrf.mxu3  ;;  %v504_v29 = vpop.f32.mrf.mxu1 }
  0xa4   :  { %v505_v31 = vadd.f32 %v504_v29, %v254_v24  ;;  %v257_v32 = vpop.f32.mrf.mxu0 }
  0xa6   :  { %v613_v34 = vadd.f32 %v1626_v1, %v505_v31  ;;  %1269 = vmatmul.msk.f32.gmra.mxu1 %vm359_vm2, %v47_v30 }
  0xa7   :  { %1231 = vmatmul.msk.f32.gmra.mxu0 %vm113_vm1, %v92_v33 }
  0xa8   :  { %v651_v35 = vmax.f32 %v613_v34, 0.0 }
  0xaa   :  { %1291 = vmatmul.msk.f32.gmra.mxu2 %vm691_vm3, %v651_v35 }
  0xab   :  { %v1684_v36 = vpop.f32.mrf.mxu3  ;;  %v507_v37 = vpop.f32.mrf.mxu1 }
  0xac   :  { %v508_v39 = vadd.f32 %v507_v37, %v257_v32  ;;  %v260_v40 = vpop.f32.mrf.mxu0  ;;  %v99_v32 = vld [vmem:[%s2155_s1 + $0xd8] sm:$0xff] }
  0xae   :  { %v614_v42 = vadd.f32 %v1626_v1, %v508_v39  ;;  %1270 = vmatmul.msk.f32.gmra.mxu1 %vm359_vm2, %v48_v38  ;;  %v55_v39 = vld [vmem:[%s2156_s0 + $0xd8] sm:$0xff] }
  0xaf   :  { %1232 = vmatmul.msk.f32.gmra.mxu0 %vm113_vm1, %v93_v41 }
  0xb0   :  { %v652_v43 = vmax.f32 %v614_v42, 0.0 }
  0xb2   :  { %1292 = vmatmul.msk.f32.gmra.mxu2 %vm691_vm3, %v652_v43  ;;  %v100_v43 = vld [vmem:[%s2155_s1 + $0xe0] sm:$0xff] }
  0xb3   :  { %v1696_v44 = vpop.f32.mrf.mxu3  ;;  %v510_v45 = vpop.f32.mrf.mxu1 }
  0xb4   :  { %v511_v47 = vadd.f32 %v510_v45, %v260_v40  ;;  %v263_v48 = vpop.f32.mrf.mxu0 }
  0xb6   :  { %v615_v50 = vadd.f32 %v1626_v1, %v511_v47  ;;  %1271 = vmatmul.msk.f32.gmra.mxu1 %vm359_vm2, %v49_v46 }
  0xb7   :  { %1233 = vmatmul.msk.f32.gmra.mxu0 %vm113_vm1, %v94_v49 }
  0xb8   :  { %v653_v51 = vmax.f32 %v615_v50, 0.0 }
  0xba   :  { %1293 = vmatmul.msk.f32.gmra.mxu2 %vm691_vm3, %v653_v51 }
  0xbb   :  { %v1708_v52 = vpop.f32.mrf.mxu3  ;;  %v513_v53 = vpop.f32.mrf.mxu1 }
  0xbc   :  { %v514_v55 = vadd.f32 %v513_v53, %v263_v48  ;;  %v266_v56 = vpop.f32.mrf.mxu0 }
  0xbe   :  { %v616_v58 = vadd.f32 %v1626_v1, %v514_v55  ;;  %1272 = vmatmul.msk.f32.gmra.mxu1 %vm359_vm2, %v50_v54 }
  0xbf   :  { %1234 = vmatmul.msk.f32.gmra.mxu0 %vm113_vm1, %v95_v57 }
  0xc0   :  { %v654_v59 = vmax.f32 %v616_v58, 0.0 }
  0xc2   :  { %1294 = vmatmul.msk.f32.gmra.mxu2 %vm691_vm3, %v654_v59 }
  0xc3   :  { %v1720_v60 = vpop.f32.mrf.mxu3  ;;  %v516_v61 = vpop.f32.mrf.mxu1 }
  0xc4   :  { %v517_v63 = vadd.f32 %v516_v61, %v266_v56  ;;  %v269_v3 = vpop.f32.mrf.mxu0 }
  0xc6   :  { %v617_v5 = vadd.f32 %v1626_v1, %v517_v63  ;;  %1273 = vmatmul.msk.f32.gmra.mxu1 %vm359_vm2, %v51_v62 }
  0xc7   :  { %1235 = vmatmul.msk.f32.gmra.mxu0 %vm113_vm1, %v96_v4 }
  0xc8   :  { %v655_v6 = vmax.f32 %v617_v5, 0.0 }
  0xca   :  { %1295 = vmatmul.msk.f32.gmra.mxu2 %vm691_vm3, %v655_v6 }
  0xcb   :  { %v1732_v7 = vpop.f32.mrf.mxu3  ;;  %v519_v8 = vpop.f32.mrf.mxu1 }
  0xcc   :  { %v520_v10 = vadd.f32 %v519_v8, %v269_v3  ;;  %v272_v12 = vpop.f32.mrf.mxu0 }
  0xce   :  { %v618_v14 = vadd.f32 %v1626_v1, %v520_v10  ;;  %1274 = vmatmul.msk.f32.gmra.mxu1 %vm359_vm2, %v52_v9 }
  0xcf   :  { %1236 = vmatmul.msk.f32.gmra.mxu0 %vm113_vm1, %v97_v13 }
  0xd0   :  { %v656_v15 = vmax.f32 %v618_v14, 0.0 }
  0xd2   :  { %1296 = vmatmul.msk.f32.gmra.mxu2 %vm691_vm3, %v656_v15 }
  0xd3   :  { %v522_v16 = vpop.f32.mrf.mxu1  ;;  %v1744_v17 = vpop.f32.mrf.mxu3 }
  0xd4   :  { %v523_v19 = vadd.f32 %v522_v16, %v272_v12  ;;  %v275_v21 = vpop.f32.mrf.mxu0 }
  0xd6   :  { %v619_v23 = vadd.f32 %v1626_v1, %v523_v19  ;;  %1275 = vmatmul.msk.f32.gmra.mxu1 %vm359_vm2, %v53_v18 }
  0xd7   :  { %1237 = vmatmul.msk.f32.gmra.mxu0 %vm113_vm1, %v98_v22 }
  0xd8   :  { %v657_v24 = vmax.f32 %v619_v23, 0.0 }
  0xda   :  { %1297 = vmatmul.msk.f32.gmra.mxu2 %vm691_vm3, %v657_v24 }
  0xdb   :  { %v525_v25 = vpop.f32.mrf.mxu1  ;;  %v582_v26 = vpop.f32.mrf.mxu3 }
  0xdc   :  { %v526_v29 = vadd.f32 %v525_v25, %v275_v21  ;;  %v583_v30 = vadd.f32 %v582_v26, %v1628_v2  ;;  %v278_v31 = vpop.f32.mrf.mxu0 }
  0xde   :  { %v620_v33 = vadd.f32 %v1626_v1, %v526_v29  ;;  %v639_v34 = vadd.f32 %v1626_v1, %v583_v30  ;;  %1276 = vmatmul.msk.f32.gmra.mxu1 %vm359_vm2, %v54_v27 }
  0xdf   :  { %1238 = vmatmul.msk.f32.gmra.mxu0 %vm113_vm1, %v99_v32 }
  0xe0   :  { %v658_v35 = vmax.f32 %v620_v33, 0.0  ;;  %v677_v37 = vmax.f32 %v639_v34, 0.0 }
  0xe2   :  { %1298 = vmatmul.msk.f32.gmra.mxu2 %vm691_vm3, %v658_v35  ;;  %1317 = vmatmul.msk.f32.vlgmr.msra.gmra.mxu3 %vm691_vm3, %v677_v37  ;;  %v1808_v35 = vperm.slane %v1622_v0, 1 }
  0xe3   :  { %v528_v2 = vpop.f32.mrf.mxu1  ;;  %v585_v38 = vpop.f32.mrf.mxu3 }
  0xe4   :  { %v529_v40 = vadd.f32 %v528_v2, %v278_v31  ;;  %v586_v41 = vadd.f32 %v585_v38, %v1644_v11  ;;  %v281_v42 = vpop.f32.mrf.mxu0 }
  0xe6   :  { %v621_v45 = vadd.f32 %v1626_v1, %v529_v40  ;;  %v640_v46 = vadd.f32 %v1626_v1, %v586_v41  ;;  %1277 = vmatmul.msk.f32.gmra.mxu1 %vm359_vm2, %v55_v39 }
  0xe7   :  { %1239 = vmatmul.msk.f32.gmra.mxu0 %vm113_vm1, %v100_v43 }
  0xe8   :  { %v659_v47 = vmax.f32 %v621_v45, 0.0  ;;  %v678_v48 = vmax.f32 %v640_v46, 0.0  ;;  %v1815_v45 = vperm.slane %v1622_v0, 2 }
  0xea   :  { %1299 = vmatmul.msk.f32.gmra.mxu2 %vm691_vm3, %v659_v47  ;;  %1318 = vmatmul.msk.f32.gmra.mxu3 %vm691_vm3, %v678_v48 }
  0xeb   :  { %v531_v11 = vpop.f32.mrf.mxu1  ;;  %v588_v49 = vpop.f32.mrf.mxu3 }
  0xec   :  { %v532_v50 = vadd.f32 %v531_v11, %v281_v42  ;;  %v589_v51 = vadd.f32 %v588_v49, %v1660_v20  ;;  %v284_v53 = vpop.f32.mrf.mxu0 }
  0xee   :  { %v622_v54 = vadd.f32 %v1626_v1, %v532_v50  ;;  %v641_v55 = vadd.f32 %v1626_v1, %v589_v51 }
  0xf0   :  { %v660_v56 = vmax.f32 %v622_v54, 0.0  ;;  %v679_v57 = vmax.f32 %v641_v55, 0.0 }
  0xf2   :  { %1300 = vmatmul.msk.f32.gmra.mxu2 %vm691_vm3, %v660_v56  ;;  %1319 = vmatmul.msk.f32.gmra.mxu3 %vm691_vm3, %v679_v57 }
  0xf3   :  { %v534_v58 = vpop.f32.mrf.mxu1  ;;  %v591_v59 = vpop.f32.mrf.mxu3 }
  0xf4   :  { %v535_v61 = vadd.f32 %v534_v58, %v284_v53  ;;  %v592_v62 = vadd.f32 %v591_v59, %v1672_v28  ;;  %v287_v63 = vpop.f32.mrf.mxu0 }
  0xf6   :  { %v623_v3 = vadd.f32 %v1626_v1, %v535_v61  ;;  %v642_v20 = vadd.f32 %v1626_v1, %v592_v62 }
  0xf8   :  { %v661_v4 = vmax.f32 %v623_v3, 0.0  ;;  %v680_v5 = vmax.f32 %v642_v20, 0.0 }
  0xfa   :  { %1301 = vmatmul.msk.f32.gmra.mxu2 %vm691_vm3, %v661_v4  ;;  %1320 = vmatmul.msk.f32.gmra.mxu3 %vm691_vm3, %v680_v5 }
  0xfb   :  { %v537_v6 = vpop.f32.mrf.mxu1  ;;  %v594_v8 = vpop.f32.mrf.mxu3 }
  0xfc   :  { %v538_v9 = vadd.f32 %v537_v6, %v287_v63  ;;  %v595_v10 = vadd.f32 %v594_v8, %v1684_v36  ;;  %v290_v12 = vpop.f32.mrf.mxu0 }
  0xfe   :  { %v624_v13 = vadd.f32 %v1626_v1, %v538_v9  ;;  %v643_v28 = vadd.f32 %v1626_v1, %v595_v10 }
 0x100   :  { %v662_v14 = vmax.f32 %v624_v13, 0.0  ;;  %v681_v15 = vmax.f32 %v643_v28, 0.0 }
 0x102   :  { %1302 = vmatmul.msk.f32.gmra.mxu2 %vm691_vm3, %v662_v14  ;;  %1321 = vmatmul.msk.f32.gmra.mxu3 %vm691_vm3, %v681_v15 }
 0x103   :  { %v540_v16 = vpop.f32.mrf.mxu1  ;;  %v597_v18 = vpop.f32.mrf.mxu3 }
 0x104   :  { %v541_v19 = vadd.f32 %v540_v16, %v290_v12  ;;  %v598_v21 = vadd.f32 %v597_v18, %v1696_v44  ;;  %v293_v22 = vpop.f32.mrf.mxu0 }
 0x106   :  { %v625_v23 = vadd.f32 %v1626_v1, %v541_v19  ;;  %v644_v36 = vadd.f32 %v1626_v1, %v598_v21 }
 0x108   :  { %v663_v24 = vmax.f32 %v625_v23, 0.0  ;;  %v682_v25 = vmax.f32 %v644_v36, 0.0 }
 0x10a   :  { %1303 = vmatmul.msk.f32.gmra.mxu2 %vm691_vm3, %v663_v24  ;;  %1322 = vmatmul.msk.f32.gmra.mxu3 %vm691_vm3, %v682_v25 }
 0x10b   :  { %v543_v26 = vpop.f32.mrf.mxu1  ;;  %v600_v27 = vpop.f32.mrf.mxu3 }
 0x10c   :  { %v544_v29 = vadd.f32 %v543_v26, %v293_v22  ;;  %v601_v30 = vadd.f32 %v600_v27, %v1708_v52  ;;  %v296_v31 = vpop.f32.mrf.mxu0 }
 0x10e   :  { %v626_v32 = vadd.f32 %v1626_v1, %v544_v29  ;;  %v645_v44 = vadd.f32 %v1626_v1, %v601_v30 }
 0x110   :  { %v664_v33 = vmax.f32 %v626_v32, 0.0  ;;  %v683_v34 = vmax.f32 %v645_v44, 0.0 }
 0x112   :  { %1304 = vmatmul.msk.f32.gmra.mxu2 %vm691_vm3, %v664_v33  ;;  %1323 = vmatmul.msk.f32.gmra.mxu3 %vm691_vm3, %v683_v34 }
 0x113   :  { %v546_v37 = vpop.f32.mrf.mxu1  ;;  %v603_v2 = vpop.f32.mrf.mxu3 }
 0x114   :  { %v547_v38 = vadd.f32 %v546_v37, %v296_v31  ;;  %v604_v39 = vadd.f32 %v603_v2, %v1720_v60  ;;  %v299_v52 = vpop.f32.mrf.mxu0 }
 0x115   :  { %v823_v40 = vpop.f32.mrf.mxu2 }
 0x116   :  { %v627_v41 = vadd.f32 %v1626_v1, %v547_v38  ;;  %v646_v42 = vadd.f32 %v1626_v1, %v604_v39  ;;  %v824_v43 = vadd.f32 %v823_v40, %v1808_v35 }
 0x118   :  { %v665_v46 = vmax.f32 %v627_v41, 0.0  ;;  %v684_v47 = vmax.f32 %v646_v42, 0.0  ;;  %v937_v48 = vmax.f32 %v824_v43, 0.0 }
 0x11a   :  { %1305 = vmatmul.msk.f32.gmra.mxu2 %vm691_vm3, %v665_v46  ;;  %1324 = vmatmul.msk.f32.gmra.mxu3 %vm691_vm3, %v684_v47  ;;  %v976_v60 = vmul.f32 %v1815_v45, %v937_v48 }
 0x11b   :  { %v549_v11 = vpop.f32.mrf.mxu1  ;;  %v606_v49 = vpop.f32.mrf.mxu3 }
 0x11c   :  { %v550_v50 = vadd.f32 %v549_v11, %v299_v52  ;;  %v607_v51 = vadd.f32 %v606_v49, %v1732_v7  ;;  %v302_v53 = vpop.f32.mrf.mxu0  ;;  %v1014_v54 = vsel %vm691_vm3, %v976_v60, 0.0 }
 0x11d   :  { %v826_v55 = vpop.f32.mrf.mxu2  ;;  %1015 = vadd.xlane.f32.xlu0 %v1014_v54 }
 0x11e   :  { %v628_v0 = vadd.f32 %v1626_v1, %v550_v50  ;;  %v647_v56 = vadd.f32 %v1626_v1, %v607_v51  ;;  %v827_v57 = vadd.f32 %v826_v55, %v1808_v35 }
 0x120   :  { %v666_v58 = vmax.f32 %v628_v0, 0.0  ;;  %v685_v59 = vmax.f32 %v647_v56, 0.0  ;;  %v938_v61 = vmax.f32 %v827_v57, 0.0 }
 0x122   :  { %1306 = vmatmul.msk.f32.gmra.mxu2 %vm691_vm3, %v666_v58  ;;  %1325 = vmatmul.msk.f32.gmra.mxu3 %vm691_vm3, %v685_v59  ;;  %v977_v7 = vmul.f32 %v1815_v45, %v938_v61 }
 0x123   :  { %v552_v62 = vpop.f32.mrf.mxu1 }
 0x124   :  { %v553_v63 = vadd.f32 %v552_v62, %v302_v53  ;;  %v305_v3 = vpop.f32.mrf.mxu0  ;;  %v1017_v20 = vsel %vm691_vm3, %v977_v7, 0.0 }
 0x125   :  { %v829_v4 = vpop.f32.mrf.mxu2  ;;  %1018 = vadd.xlane.f32.xlu0 %v1017_v20 }
 0x126   :  { %v629_v5 = vadd.f32 %v1626_v1, %v553_v63  ;;  %v830_v6 = vadd.f32 %v829_v4, %v1808_v35 }
 0x128   :  { %v667_v8 = vmax.f32 %v629_v5, 0.0  ;;  %v939_v9 = vmax.f32 %v830_v6, 0.0 }
 0x12a   :  { %1307 = vmatmul.msk.f32.gmra.mxu2 %vm691_vm3, %v667_v8  ;;  %v978_v10 = vmul.f32 %v1815_v45, %v939_v9 }
 0x12b   :  { %v555_v12 = vpop.f32.mrf.mxu1 }
 0x12c   :  { %v556_v13 = vadd.f32 %v555_v12, %v305_v3  ;;  %v308_v28 = vpop.f32.mrf.mxu0  ;;  %v1020_v14 = vsel %vm691_vm3, %v978_v10, 0.0 }
 0x12d   :  { %v832_v15 = vpop.f32.mrf.mxu2  ;;  %1021 = vadd.xlane.f32.xlu1 %v1020_v14 }
 0x12e   :  { %v630_v16 = vadd.f32 %v1626_v1, %v556_v13  ;;  %v833_v18 = vadd.f32 %v832_v15, %v1808_v35 }
 0x130   :  { %v668_v19 = vmax.f32 %v630_v16, 0.0  ;;  %v940_v21 = vmax.f32 %v833_v18, 0.0 }
 0x132   :  { %1308 = vmatmul.msk.f32.gmra.mxu2 %vm691_vm3, %v668_v19  ;;  %v979_v22 = vmul.f32 %v1815_v45, %v940_v21 }
 0x133   :  { %v558_v23 = vpop.f32.mrf.mxu1 }
 0x134   :  { %v559_v36 = vadd.f32 %v558_v23, %v308_v28  ;;  %v311_v24 = vpop.f32.mrf.mxu0  ;;  %v1023_v25 = vsel %vm691_vm3, %v979_v22, 0.0 }
 0x135   :  { %v835_v26 = vpop.f32.mrf.mxu2  ;;  %1024 = vadd.xlane.f32.xlu1 %v1023_v25 }
 0x136   :  { %v631_v27 = vadd.f32 %v1626_v1, %v559_v36  ;;  %v836_v29 = vadd.f32 %v835_v26, %v1808_v35 }
 0x138   :  { %v669_v30 = vmax.f32 %v631_v27, 0.0  ;;  %v941_v31 = vmax.f32 %v836_v29, 0.0 }
 0x13a   :  { %1309 = vmatmul.msk.f32.gmra.mxu2 %vm691_vm3, %v669_v30  ;;  %v980_v32 = vmul.f32 %v1815_v45, %v941_v31 }
 0x13b   :  { %v561_v44 = vpop.f32.mrf.mxu1 }
 0x13c   :  { %v562_v33 = vadd.f32 %v561_v44, %v311_v24  ;;  %v314_v34 = vpop.f32.mrf.mxu0  ;;  %v1026_v37 = vsel %vm691_vm3, %v980_v32, 0.0 }
 0x13d   :  { %v838_v2 = vpop.f32.mrf.mxu2  ;;  %1027 = vadd.xlane.f32.xlu2 %v1026_v37 }
 0x13e   :  { %v632_v38 = vadd.f32 %v1626_v1, %v562_v33  ;;  %v839_v39 = vadd.f32 %v838_v2, %v1808_v35 }
 0x140   :  { %v670_v52 = vmax.f32 %v632_v38, 0.0  ;;  %v942_v40 = vmax.f32 %v839_v39, 0.0 }
 0x142   :  { %1310 = vmatmul.msk.f32.gmra.mxu2 %vm691_vm3, %v670_v52  ;;  %v981_v41 = vmul.f32 %v1815_v45, %v942_v40 }
 0x143   :  { %v564_v42 = vpop.f32.mrf.mxu1 }
 0x144   :  { %v565_v43 = vadd.f32 %v564_v42, %v314_v34  ;;  %v317_v46 = vpop.f32.mrf.mxu0  ;;  %v1029_v47 = vsel %vm691_vm3, %v981_v41, 0.0 }
 0x145   :  { %v841_v48 = vpop.f32.mrf.mxu2  ;;  %1030 = vadd.xlane.f32.xlu2 %v1029_v47 }
 0x146   :  { %v633_v60 = vadd.f32 %v1626_v1, %v565_v43  ;;  %v842_v11 = vadd.f32 %v841_v48, %v1808_v35 }
 0x148   :  { %v671_v49 = vmax.f32 %v633_v60, 0.0  ;;  %v943_v50 = vmax.f32 %v842_v11, 0.0 }
 0x14a   :  { %1311 = vmatmul.msk.f32.gmra.mxu2 %vm691_vm3, %v671_v49  ;;  %v982_v51 = vmul.f32 %v1815_v45, %v943_v50 }
 0x14b   :  { %v567_v53 = vpop.f32.mrf.mxu1 }
 0x14c   :  { %v568_v54 = vadd.f32 %v567_v53, %v317_v46  ;;  %v320_v55 = vpop.f32.mrf.mxu0  ;;  %v1032_v0 = vsel %vm691_vm3, %v982_v51, 0.0 }
 0x14d   :  { %v844_v56 = vpop.f32.mrf.mxu2  ;;  %1033 = vadd.xlane.f32.xlu0 %v1032_v0 }
 0x14e   :  { %v634_v57 = vadd.f32 %v1626_v1, %v568_v54  ;;  %v845_v58 = vadd.f32 %v844_v56, %v1808_v35 }
 0x150   :  { %v672_v59 = vmax.f32 %v634_v57, 0.0  ;;  %v944_v61 = vmax.f32 %v845_v58, 0.0 }
 0x152   :  { %1312 = vmatmul.msk.f32.gmra.mxu2 %vm691_vm3, %v672_v59  ;;  %v983_v7 = vmul.f32 %v1815_v45, %v944_v61 }
 0x153   :  { %v570_v62 = vpop.f32.mrf.mxu1 }
 0x154   :  { %v571_v63 = vadd.f32 %v570_v62, %v320_v55  ;;  %v323_v3 = vpop.f32.mrf.mxu0  ;;  %v1035_v20 = vsel %vm691_vm3, %v983_v7, 0.0 }
 0x155   :  { %v847_v4 = vpop.f32.mrf.mxu2  ;;  %1036 = vadd.xlane.f32.xlu1 %v1035_v20 }
 0x156   :  { %v635_v5 = vadd.f32 %v1626_v1, %v571_v63  ;;  %v848_v6 = vadd.f32 %v847_v4, %v1808_v35 }
 0x158   :  { %v673_v8 = vmax.f32 %v635_v5, 0.0  ;;  %v945_v9 = vmax.f32 %v848_v6, 0.0 }
 0x15a   :  { %1313 = vmatmul.msk.f32.gmra.mxu2 %vm691_vm3, %v673_v8  ;;  %v984_v10 = vmul.f32 %v1815_v45, %v945_v9 }
 0x15b   :  { %v573_v12 = vpop.f32.mrf.mxu1 }
 0x15c   :  { %v574_v13 = vadd.f32 %v573_v12, %v323_v3  ;;  %v326_v28 = vpop.f32.mrf.mxu0  ;;  %v1038_v14 = vsel %vm691_vm3, %v984_v10, 0.0 }
 0x15d   :  { %v850_v15 = vpop.f32.mrf.mxu2  ;;  %1039 = vadd.xlane.f32.xlu2 %v1038_v14 }
 0x15e   :  { %v636_v16 = vadd.f32 %v1626_v1, %v574_v13  ;;  %v851_v18 = vadd.f32 %v850_v15, %v1808_v35 }
 0x160   :  { %v674_v19 = vmax.f32 %v636_v16, 0.0  ;;  %v946_v21 = vmax.f32 %v851_v18, 0.0 }
 0x162   :  { %1314 = vmatmul.msk.f32.gmra.mxu2 %vm691_vm3, %v674_v19  ;;  %v985_v22 = vmul.f32 %v1815_v45, %v946_v21 }
 0x163   :  { %v576_v23 = vpop.f32.mrf.mxu1 }
 0x164   :  { %v577_v36 = vadd.f32 %v576_v23, %v326_v28  ;;  %v329_v24 = vpop.f32.mrf.mxu0  ;;  %v1041_v25 = vsel %vm691_vm3, %v985_v22, 0.0 }
 0x165   :  { %v853_v26 = vpop.f32.mrf.mxu2  ;;  %v910_v27 = vpop.f32.mrf.mxu3  ;;  %1042 = vadd.xlane.f32.xlu0 %v1041_v25  ;;  %v580_v44 = vadd.f32 %v1744_v17, %v329_v24 }
 0x166   :  { %v637_v29 = vadd.f32 %v1626_v1, %v577_v36  ;;  %v854_v30 = vadd.f32 %v853_v26, %v1808_v35  ;;  %v911_v31 = vadd.f32 %v910_v27, %v1808_v35  ;;  %v1909_v36 = vstv %s2159_s6 }
 0x167   :  { %v638_v38 = vadd.f32 %v1626_v1, %v580_v44 }
 0x168   :  { %v675_v32 = vmax.f32 %v637_v29, 0.0  ;;  %v947_v33 = vmax.f32 %v854_v30, 0.0  ;;  %v966_v34 = vmax.f32 %v911_v31, 0.0 }
 0x169   :  { %v676_v43 = vmax.f32 %v638_v38, 0.0 }
 0x16a   :  { %1315 = vmatmul.msk.f32.gmra.mxu2 %vm691_vm3, %v675_v32  ;;  %v1005_v37 = vmul.f32 %v1815_v45, %v966_v34  ;;  %v986_v2 = vmul.f32 %v1815_v45, %v947_v33 }
 0x16c   :  { %v1101_v39 = vsel %vm691_vm3, %v1005_v37, 0.0  ;;  %v1044_v52 = vsel %vm691_vm3, %v986_v2, 0.0 }
 0x16d   :  { %v856_v40 = vpop.f32.mrf.mxu2  ;;  %v913_v41 = vpop.f32.mrf.mxu3  ;;  %1102 = vadd.xlane.f32.xlu2 %v1101_v39  ;;  %1045 = vadd.xlane.f32.xlu1 %v1044_v52 }
 0x16e   :  { %v857_v17 = vadd.f32 %v856_v40, %v1808_v35  ;;  %v914_v42 = vadd.f32 %v913_v41, %v1808_v35 }
 0x170   :  { %v948_v46 = vmax.f32 %v857_v17, 0.0  ;;  %v967_v47 = vmax.f32 %v914_v42, 0.0 }
 0x172   :  { %1316 = vmatmul.msk.f32.gmra.mxu2 %vm691_vm3, %v676_v43  ;;  %v987_v48 = vmul.f32 %v1815_v45, %v948_v46  ;;  %v1006_v1 = vmul.f32 %v1815_v45, %v967_v47 }
 0x174   :  { %v1047_v60 = vsel %vm691_vm3, %v987_v48, 0.0  ;;  %v1104_v11 = vsel %vm691_vm3, %v1006_v1, 0.0 }
 0x175   :  { %v859_v49 = vpop.f32.mrf.mxu2  ;;  %v916_v50 = vpop.f32.mrf.mxu3  ;;  %1048 = vadd.xlane.f32.xlu2 %v1047_v60  ;;  %1105 = vadd.xlane.f32.xlu0 %v1104_v11 }
 0x176   :  { %v860_v51 = vadd.f32 %v859_v49, %v1808_v35  ;;  %v917_v53 = vadd.f32 %v916_v50, %v1808_v35 }
 0x178   :  { %v949_v54 = vmax.f32 %v860_v51, 0.0  ;;  %v968_v55 = vmax.f32 %v917_v53, 0.0 }
 0x17a   :  { %v1007_v0 = vmul.f32 %v1815_v45, %v968_v55  ;;  %v988_v56 = vmul.f32 %v1815_v45, %v949_v54 }
 0x17c   :  { %v1107_v57 = vsel %vm691_vm3, %v1007_v0, 0.0  ;;  %v1050_v58 = vsel %vm691_vm3, %v988_v56, 0.0 }
 0x17d   :  { %v862_v59 = vpop.f32.mrf.mxu2  ;;  %v919_v61 = vpop.f32.mrf.mxu3  ;;  %1108 = vadd.xlane.f32.xlu1 %v1107_v57  ;;  %1051 = vadd.xlane.f32.xlu0 %v1050_v58 }
 0x17e   :  { %v863_v7 = vadd.f32 %v862_v59, %v1808_v35  ;;  %v920_v62 = vadd.f32 %v919_v61, %v1808_v35 }
 0x180   :  { %v950_v63 = vmax.f32 %v863_v7, 0.0  ;;  %v969_v3 = vmax.f32 %v920_v62, 0.0 }
 0x182   :  { %v1008_v20 = vmul.f32 %v1815_v45, %v969_v3  ;;  %v989_v4 = vmul.f32 %v1815_v45, %v950_v63 }
 0x184   :  { %v1110_v5 = vsel %vm691_vm3, %v1008_v20, 0.0  ;;  %v1053_v6 = vsel %vm691_vm3, %v989_v4, 0.0 }
 0x185   :  { %v865_v8 = vpop.f32.mrf.mxu2  ;;  %v922_v9 = vpop.f32.mrf.mxu3  ;;  %1111 = vadd.xlane.f32.xlu2 %v1110_v5  ;;  %1054 = vadd.xlane.f32.xlu1 %v1053_v6 }
 0x186   :  { %v866_v10 = vadd.f32 %v865_v8, %v1808_v35  ;;  %v923_v12 = vadd.f32 %v922_v9, %v1808_v35 }
 0x188   :  { %v951_v13 = vmax.f32 %v866_v10, 0.0  ;;  %v970_v28 = vmax.f32 %v923_v12, 0.0 }
 0x18a   :  { %v990_v14 = vmul.f32 %v1815_v45, %v951_v13  ;;  %v1009_v15 = vmul.f32 %v1815_v45, %v970_v28 }
 0x18c   :  { %v1056_v16 = vsel %vm691_vm3, %v990_v14, 0.0  ;;  %v1113_v18 = vsel %vm691_vm3, %v1009_v15, 0.0 }
 0x18d   :  { %v868_v19 = vpop.f32.mrf.mxu2  ;;  %v925_v21 = vpop.f32.mrf.mxu3  ;;  %1057 = vadd.xlane.f32.xlu2 %v1056_v16  ;;  %1114 = vadd.xlane.f32.xlu0 %v1113_v18 }
 0x18e   :  { %v869_v22 = vadd.f32 %v868_v19, %v1808_v35  ;;  %v926_v23 = vadd.f32 %v925_v21, %v1808_v35 }
 0x190   :  { %v952_v24 = vmax.f32 %v869_v22, 0.0  ;;  %v971_v25 = vmax.f32 %v926_v23, 0.0  ;;  %v1016_v26 = vpop.xlane.xlu0 %1015 }
 0x191   :  { %v1130_v27 = vadd.f32 %v1909_v36, %v1016_v26 }
 0x192   :  { %v1010_v29 = vmul.f32 %v1815_v45, %v971_v25  ;;  %v991_v30 = vmul.f32 %v1815_v45, %v952_v24 }
 0x193   :  { %1169 = vst.msk [vmem:[%s2160_s7] sm:$0xff] %vm1168_vm4, %v1130_v27 }
 0x194   :  { %v1116_v31 = vsel %vm691_vm3, %v1010_v29, 0.0  ;;  %v1059_v32 = vsel %vm691_vm3, %v991_v30, 0.0 }
 0x195   :  { %v871_v44 = vpop.f32.mrf.mxu2  ;;  %1117 = vadd.xlane.f32.xlu1 %v1116_v31  ;;  %1060 = vadd.xlane.f32.xlu0 %v1059_v32 }
 0x196   :  { %v872_v33 = vadd.f32 %v871_v44, %v1808_v35 }
 0x198   :  { %v953_v34 = vmax.f32 %v872_v33, 0.0  ;;  %v1019_v37 = vpop.xlane.xlu0 %1018 }
 0x199   :  { %v1131_v2 = vadd.f32 %v1909_v36, %v1019_v37 }
 0x19a   :  { %v992_v38 = vmul.f32 %v1815_v45, %v953_v34 }
 0x19b   :  { %1170 = vst.msk [vmem:[%s2160_s7 + $0x8] sm:$0xff] %vm1168_vm4, %v1131_v2 }
 0x19c   :  { %v1062_v39 = vsel %vm691_vm3, %v992_v38, 0.0 }
 0x19d   :  { %v874_v52 = vpop.f32.mrf.mxu2  ;;  %1063 = vadd.xlane.f32.xlu1 %v1062_v39 }
 0x19e   :  { %v875_v40 = vadd.f32 %v874_v52, %v1808_v35  ;;  %v928_v52 = vpop.f32.mrf.mxu3 }
 0x1a0   :  { %v954_v41 = vmax.f32 %v875_v40, 0.0  ;;  %v1022_v17 = vpop.xlane.xlu1 %1021 }
 0x1a1   :  { %v1132_v42 = vadd.f32 %v1909_v36, %v1022_v17 }
 0x1a2   :  { %v993_v43 = vmul.f32 %v1815_v45, %v954_v41 }
 0x1a3   :  { %1171 = vst.msk [vmem:[%s2160_s7 + $0x10] sm:$0xff] %vm1168_vm4, %v1132_v42 }
 0x1a4   :  { %v1065_v46 = vsel %vm691_vm3, %v993_v43, 0.0 }
 0x1a5   :  { %v877_v47 = vpop.f32.mrf.mxu2  ;;  %1066 = vadd.xlane.f32.xlu2 %v1065_v46 }
 0x1a6   :  { %v878_v48 = vadd.f32 %v877_v47, %v1808_v35  ;;  %v929_v47 = vadd.f32 %v928_v52, %v1808_v35 }
 0x1a8   :  { %v955_v1 = vmax.f32 %v878_v48, 0.0  ;;  %v1025_v60 = vpop.xlane.xlu1 %1024 }
 0x1a9   :  { %v1133_v11 = vadd.f32 %v1909_v36, %v1025_v60 }
 0x1aa   :  { %v994_v49 = vmul.f32 %v1815_v45, %v955_v1 }
 0x1ab   :  { %1172 = vst.msk [vmem:[%s2160_s7 + $0x18] sm:$0xff] %vm1168_vm4, %v1133_v11 }
 0x1ac   :  { %v1068_v50 = vsel %vm691_vm3, %v994_v49, 0.0 }
 0x1ad   :  { %v880_v51 = vpop.f32.mrf.mxu2  ;;  %1069 = vadd.xlane.f32.xlu0 %v1068_v50 }
 0x1ae   :  { %v881_v53 = vadd.f32 %v880_v51, %v1808_v35  ;;  %v931_v51 = vpop.f32.mrf.mxu3 }
 0x1b0   :  { %v956_v54 = vmax.f32 %v881_v53, 0.0  ;;  %v1028_v55 = vpop.xlane.xlu2 %1027  ;;  %v972_v53 = vmax.f32 %v929_v47, 0.0 }
 0x1b1   :  { %v1134_v0 = vadd.f32 %v1909_v36, %v1028_v55 }
 0x1b2   :  { %v995_v56 = vmul.f32 %v1815_v45, %v956_v54 }
 0x1b3   :  { %1173 = vst.msk [vmem:[%s2160_s7 + $0x20] sm:$0xff] %vm1168_vm4, %v1134_v0 }
 0x1b4   :  { %v1071_v57 = vsel %vm691_vm3, %v995_v56, 0.0  ;;  %v932_v56 = vadd.f32 %v931_v51, %v1808_v35 }
 0x1b5   :  { %v883_v58 = vpop.f32.mrf.mxu2  ;;  %1072 = vadd.xlane.f32.xlu1 %v1071_v57 }
 0x1b6   :  { %v884_v59 = vadd.f32 %v883_v58, %v1808_v35 }
 0x1b8   :  { %v957_v61 = vmax.f32 %v884_v59, 0.0  ;;  %v1031_v7 = vpop.xlane.xlu2 %1030 }
 0x1b9   :  { %v1135_v62 = vadd.f32 %v1909_v36, %v1031_v7 }
 0x1ba   :  { %v996_v63 = vmul.f32 %v1815_v45, %v957_v61  ;;  %v1011_v61 = vmul.f32 %v1815_v45, %v972_v53 }
 0x1bb   :  { %1174 = vst.msk [vmem:[%s2160_s7 + $0x28] sm:$0xff] %vm1168_vm4, %v1135_v62 }
 0x1bc   :  { %v1074_v3 = vsel %vm691_vm3, %v996_v63, 0.0 }
 0x1bd   :  { %v886_v20 = vpop.f32.mrf.mxu2  ;;  %1075 = vadd.xlane.f32.xlu2 %v1074_v3  ;;  %v973_v3 = vmax.f32 %v932_v56, 0.0 }
 0x1be   :  { %v887_v4 = vadd.f32 %v886_v20, %v1808_v35  ;;  %v1119_v20 = vsel %vm691_vm3, %v1011_v61, 0.0 }
 0x1c0   :  { %v958_v5 = vmax.f32 %v887_v4, 0.0  ;;  %v1034_v6 = vpop.xlane.xlu0 %1033 }
 0x1c1   :  { %v1136_v8 = vadd.f32 %v1909_v36, %v1034_v6 }
 0x1c2   :  { %v997_v9 = vmul.f32 %v1815_v45, %v958_v5  ;;  %v934_v5 = vpop.f32.mrf.mxu3 }
 0x1c3   :  { %1175 = vst.msk [vmem:[%s2160_s7 + $0x30] sm:$0xff] %vm1168_vm4, %v1136_v8 }
 0x1c4   :  { %v1077_v10 = vsel %vm691_vm3, %v997_v9, 0.0  ;;  %v935_v9 = vadd.f32 %v934_v5, %v1808_v35 }
 0x1c5   :  { %v889_v12 = vpop.f32.mrf.mxu2  ;;  %1078 = vadd.xlane.f32.xlu0 %v1077_v10 }
 0x1c6   :  { %v890_v13 = vadd.f32 %v889_v12, %v1808_v35 }
 0x1c8   :  { %v959_v28 = vmax.f32 %v890_v13, 0.0  ;;  %v1037_v14 = vpop.xlane.xlu1 %1036 }
 0x1c9   :  { %v1137_v15 = vadd.f32 %v1909_v36, %v1037_v14 }
 0x1ca   :  { %v998_v16 = vmul.f32 %v1815_v45, %v959_v28  ;;  %v1012_v28 = vmul.f32 %v1815_v45, %v973_v3 }
 0x1cb   :  { %1176 = vst.msk [vmem:[%s2160_s7 + $0x38] sm:$0xff] %vm1168_vm4, %v1137_v15 }
 0x1cc   :  { %v1080_v18 = vsel %vm691_vm3, %v998_v16, 0.0 }
 0x1cd   :  { %v892_v19 = vpop.f32.mrf.mxu2  ;;  %1081 = vadd.xlane.f32.xlu1 %v1080_v18  ;;  %v974_v18 = vmax.f32 %v935_v9, 0.0 }
 0x1ce   :  { %v893_v21 = vadd.f32 %v892_v19, %v1808_v35  ;;  %v1122_v19 = vsel %vm691_vm3, %v1012_v28, 0.0 }
 0x1d0   :  { %v960_v22 = vmax.f32 %v893_v21, 0.0  ;;  %v1040_v23 = vpop.xlane.xlu2 %1039 }
 0x1d1   :  { %v1138_v24 = vadd.f32 %v1909_v36, %v1040_v23  ;;  %v1013_v23 = vmul.f32 %v1815_v45, %v974_v18 }
 0x1d2   :  { %v999_v25 = vmul.f32 %v1815_v45, %v960_v22 }
 0x1d3   :  { %1177 = vst.msk [vmem:[%s2160_s7 + $0x40] sm:$0xff] %vm1168_vm4, %v1138_v24 }
 0x1d4   :  { %v1083_v26 = vsel %vm691_vm3, %v999_v25, 0.0 }
 0x1d5   :  { %v895_v27 = vpop.f32.mrf.mxu2  ;;  %1084 = vadd.xlane.f32.xlu2 %v1083_v26  ;;  %v1125_v26 = vsel %vm691_vm3, %v1013_v23, 0.0 }
 0x1d6   :  { %v896_v29 = vadd.f32 %v895_v27, %v1808_v35 }
 0x1d8   :  { %v961_v30 = vmax.f32 %v896_v29, 0.0  ;;  %v1043_v31 = vpop.xlane.xlu0 %1042 }
 0x1d9   :  { %v1139_v32 = vadd.f32 %v1909_v36, %v1043_v31 }
 0x1da   :  { %v1000_v44 = vmul.f32 %v1815_v45, %v961_v30 }
 0x1db   :  { %1178 = vst.msk [vmem:[%s2160_s7 + $0x48] sm:$0xff] %vm1168_vm4, %v1139_v32 }
 0x1dc   :  { %v1086_v33 = vsel %vm691_vm3, %v1000_v44, 0.0 }
 0x1dd   :  { %v898_v34 = vpop.f32.mrf.mxu2  ;;  %1087 = vadd.xlane.f32.xlu0 %v1086_v33 }
 0x1de   :  { %v899_v37 = vadd.f32 %v898_v34, %v1808_v35 }
 0x1e0   :  { %v962_v2 = vmax.f32 %v899_v37, 0.0  ;;  %v1103_v38 = vpop.xlane.xlu2 %1102  ;;  %v1046_v39 = vpop.xlane.xlu1 %1045 }
 0x1e1   :  { %v1159_v40 = vadd.f32 %v1909_v36, %v1103_v38  ;;  %v1140_v41 = vadd.f32 %v1909_v36, %v1046_v39 }
 0x1e2   :  { %v1001_v17 = vmul.f32 %v1815_v45, %v962_v2 }
 0x1e3   :  { %1198 = vst.msk [vmem:[%s2160_s7 + $0xe8] sm:$0xff] %vm1168_vm4, %v1159_v40 }
 0x1e4   :  { %1179 = vst.msk [vmem:[%s2160_s7 + $0x50] sm:$0xff] %vm1168_vm4, %v1140_v41  ;;  %v1089_v42 = vsel %vm691_vm3, %v1001_v17, 0.0 }
 0x1e5   :  { %v901_v43 = vpop.f32.mrf.mxu2  ;;  %1090 = vadd.xlane.f32.xlu1 %v1089_v42 }
 0x1e6   :  { %v902_v46 = vadd.f32 %v901_v43, %v1808_v35 }
 0x1e8   :  { %v963_v48 = vmax.f32 %v902_v46, 0.0  ;;  %v1049_v1 = vpop.xlane.xlu2 %1048  ;;  %v1106_v60 = vpop.xlane.xlu0 %1105 }
 0x1e9   :  { %v1141_v11 = vadd.f32 %v1909_v36, %v1049_v1  ;;  %v1160_v49 = vadd.f32 %v1909_v36, %v1106_v60 }
 0x1ea   :  { %v1002_v50 = vmul.f32 %v1815_v45, %v963_v48 }
 0x1eb   :  { %1180 = vst.msk [vmem:[%s2160_s7 + $0x58] sm:$0xff] %vm1168_vm4, %v1141_v11 }
 0x1ec   :  { %1199 = vst.msk [vmem:[%s2160_s7 + $0xf0] sm:$0xff] %vm1168_vm4, %v1160_v49  ;;  %v1092_v54 = vsel %vm691_vm3, %v1002_v50, 0.0 }
 0x1ed   :  { %v904_v55 = vpop.f32.mrf.mxu2  ;;  %1093 = vadd.xlane.f32.xlu2 %v1092_v54 }
 0x1ee   :  { %v905_v0 = vadd.f32 %v904_v55, %v1808_v35 }
 0x1f0   :  { %v964_v57 = vmax.f32 %v905_v0, 0.0  ;;  %v1109_v58 = vpop.xlane.xlu1 %1108  ;;  %v1052_v59 = vpop.xlane.xlu0 %1051 }
 0x1f1   :  { %v1161_v7 = vadd.f32 %v1909_v36, %v1109_v58  ;;  %v1142_v62 = vadd.f32 %v1909_v36, %v1052_v59 }
 0x1f2   :  { %v1003_v63 = vmul.f32 %v1815_v45, %v964_v57 }
 0x1f3   :  { %1200 = vst.msk [vmem:[%s2160_s7 + $0xf8] sm:$0xff] %vm1168_vm4, %v1161_v7 }
 0x1f4   :  { %1181 = vst.msk [vmem:[%s2160_s7 + $0x60] sm:$0xff] %vm1168_vm4, %v1142_v62  ;;  %v1095_v4 = vsel %vm691_vm3, %v1003_v63, 0.0 }
 0x1f5   :  { %v907_v6 = vpop.f32.mrf.mxu2  ;;  %1120 = vadd.xlane.f32.xlu2 %v1119_v20  ;;  %1096 = vadd.xlane.f32.xlu0 %v1095_v4 }
 0x1f6   :  { %v908_v8 = vadd.f32 %v907_v6, %v1808_v35 }
 0x1f8   :  { %v965_v10 = vmax.f32 %v908_v8, 0.0  ;;  %v1112_v12 = vpop.xlane.xlu2 %1111  ;;  %v1055_v13 = vpop.xlane.xlu1 %1054 }
 0x1f9   :  { %v1162_v14 = vadd.f32 %v1909_v36, %v1112_v12  ;;  %v1143_v15 = vadd.f32 %v1909_v36, %v1055_v13 }
 0x1fa   :  { %v1004_v16 = vmul.f32 %v1815_v45, %v965_v10 }
 0x1fb   :  { %1201 = vst.msk [vmem:[%s2160_s7 + $0x100] sm:$0xff] %vm1168_vm4, %v1162_v14 }
 0x1fc   :  { %1182 = vst.msk [vmem:[%s2160_s7 + $0x68] sm:$0xff] %vm1168_vm4, %v1143_v15  ;;  %v1098_v35 = vsel %vm691_vm3, %v1004_v16, 0.0 }
 0x1fd   :  { %1099 = vadd.xlane.f32.xlu1 %v1098_v35  ;;  %1123 = vadd.xlane.f32.xlu0 %v1122_v19 }
 0x200   :  { %v1058_v21 = vpop.xlane.xlu2 %1057  ;;  %v1115_v22 = vpop.xlane.xlu0 %1114 }
 0x201   :  { %v1144_v24 = vadd.f32 %v1909_v36, %v1058_v21  ;;  %v1163_v25 = vadd.f32 %v1909_v36, %v1115_v22 }
 0x203   :  { %1183 = vst.msk [vmem:[%s2160_s7 + $0x70] sm:$0xff] %vm1168_vm4, %v1144_v24 }
 0x204   :  { %1202 = vst.msk [vmem:[%s2160_s7 + $0x108] sm:$0xff] %vm1168_vm4, %v1163_v25 }
 0x205   :  { %1126 = vadd.xlane.f32.xlu1 %v1125_v26 }
 0x208   :  { %v1118_v27 = vpop.xlane.xlu1 %1117  ;;  %v1061_v29 = vpop.xlane.xlu0 %1060 }
 0x209   :  { %v1164_v45 = vadd.f32 %v1909_v36, %v1118_v27  ;;  %v1145_v30 = vadd.f32 %v1909_v36, %v1061_v29 }
 0x20b   :  { %1203 = vst.msk [vmem:[%s2160_s7 + $0x110] sm:$0xff] %vm1168_vm4, %v1164_v45 }
 0x20c   :  { %1184 = vst.msk [vmem:[%s2160_s7 + $0x78] sm:$0xff] %vm1168_vm4, %v1145_v30 }
 0x210   :  { %v1064_v31 = vpop.xlane.xlu1 %1063 }
 0x211   :  { %v1146_v32 = vadd.f32 %v1909_v36, %v1064_v31 }
 0x213   :  { %1185 = vst.msk [vmem:[%s2160_s7 + $0x80] sm:$0xff] %vm1168_vm4, %v1146_v32 }
 0x218   :  { %v1067_v44 = vpop.xlane.xlu2 %1066 }
 0x219   :  { %v1147_v33 = vadd.f32 %v1909_v36, %v1067_v44 }
 0x21b   :  { %1186 = vst.msk [vmem:[%s2160_s7 + $0x88] sm:$0xff] %vm1168_vm4, %v1147_v33 }
 0x220   :  { %v1070_v34 = vpop.xlane.xlu0 %1069 }
 0x221   :  { %v1148_v37 = vadd.f32 %v1909_v36, %v1070_v34 }
 0x223   :  { %1187 = vst.msk [vmem:[%s2160_s7 + $0x90] sm:$0xff] %vm1168_vm4, %v1148_v37 }
 0x228   :  { %v1073_v2 = vpop.xlane.xlu1 %1072 }
 0x229   :  { %v1149_v38 = vadd.f32 %v1909_v36, %v1073_v2 }
 0x22b   :  { %1188 = vst.msk [vmem:[%s2160_s7 + $0x98] sm:$0xff] %vm1168_vm4, %v1149_v38 }
 0x230   :  { %v1076_v39 = vpop.xlane.xlu2 %1075 }
 0x231   :  { %v1150_v52 = vadd.f32 %v1909_v36, %v1076_v39 }
 0x233   :  { %1189 = vst.msk [vmem:[%s2160_s7 + $0xa0] sm:$0xff] %vm1168_vm4, %v1150_v52 }
 0x238   :  { %v1079_v40 = vpop.xlane.xlu0 %1078 }
 0x239   :  { %v1151_v41 = vadd.f32 %v1909_v36, %v1079_v40 }
 0x23b   :  { %1190 = vst.msk [vmem:[%s2160_s7 + $0xa8] sm:$0xff] %vm1168_vm4, %v1151_v41 }
 0x240   :  { %v1082_v17 = vpop.xlane.xlu1 %1081 }
 0x241   :  { %v1152_v42 = vadd.f32 %v1909_v36, %v1082_v17 }
 0x243   :  { %1191 = vst.msk [vmem:[%s2160_s7 + $0xb0] sm:$0xff] %vm1168_vm4, %v1152_v42 }
 0x248   :  { %v1085_v43 = vpop.xlane.xlu2 %1084 }
 0x249   :  { %v1153_v46 = vadd.f32 %v1909_v36, %v1085_v43 }
 0x24b   :  { %1192 = vst.msk [vmem:[%s2160_s7 + $0xb8] sm:$0xff] %vm1168_vm4, %v1153_v46 }
 0x250   :  { %v1088_v47 = vpop.xlane.xlu0 %1087 }
 0x251   :  { %v1154_v48 = vadd.f32 %v1909_v36, %v1088_v47 }
 0x253   :  { %1193 = vst.msk [vmem:[%s2160_s7 + $0xc0] sm:$0xff] %vm1168_vm4, %v1154_v48 }
 0x258   :  { %v1091_v1 = vpop.xlane.xlu1 %1090 }
 0x259   :  { %v1155_v60 = vadd.f32 %v1909_v36, %v1091_v1 }
 0x25b   :  { %1194 = vst.msk [vmem:[%s2160_s7 + $0xc8] sm:$0xff] %vm1168_vm4, %v1155_v60 }
 0x260   :  { %v1094_v11 = vpop.xlane.xlu2 %1093 }
 0x261   :  { %v1156_v49 = vadd.f32 %v1909_v36, %v1094_v11 }
 0x263   :  { %1195 = vst.msk [vmem:[%s2160_s7 + $0xd0] sm:$0xff] %vm1168_vm4, %v1156_v49 }
 0x268   :  { %v1121_v50 = vpop.xlane.xlu2 %1120  ;;  %v1097_v51 = vpop.xlane.xlu0 %1096 }
 0x269   :  { %v1165_v53 = vadd.f32 %v1909_v36, %v1121_v50  ;;  %v1157_v54 = vadd.f32 %v1909_v36, %v1097_v51 }
 0x26b   :  { %1204 = vst.msk [vmem:[%s2160_s7 + $0x118] sm:$0xff] %vm1168_vm4, %v1165_v53 }
 0x26c   :  { %1196 = vst.msk [vmem:[%s2160_s7 + $0xd8] sm:$0xff] %vm1168_vm4, %v1157_v54 }
 0x270   :  { %v1100_v55 = vpop.xlane.xlu1 %1099  ;;  %v1124_v0 = vpop.xlane.xlu0 %1123 }
 0x271   :  { %v1158_v56 = vadd.f32 %v1909_v36, %v1100_v55  ;;  %v1166_v57 = vadd.f32 %v1909_v36, %v1124_v0 }
 0x273   :  { %1197 = vst.msk [vmem:[%s2160_s7 + $0xe0] sm:$0xff] %vm1168_vm4, %v1158_v56 }
 0x274   :  { %1205 = vst.msk [vmem:[%s2160_s7 + $0x120] sm:$0xff] %vm1168_vm4, %v1166_v57 }
 0x278   :  { %v1127_v58 = vpop.xlane.xlu1 %1126 }
 0x279   :  { %v1167_v59 = vadd.f32 %v1909_v36, %v1127_v58 }
 0x27b   :  { %1206 = vst.msk [vmem:[%s2160_s7 + $0x128] sm:$0xff] %vm1168_vm4, %v1167_v59 }

</bundles_post_ra>
